<compile_context>
chip_gen: v6e
topology: v6e:2x2x1
jax: 0.10.0
libtpu: 0.0.40
codegen_flags: <defaults>
</compile_context>

<pallas_src>
import math
from functools import partial

import jax
import jax.numpy as jnp
from jax.experimental import pallas as pl
from jax.experimental.pallas import tpu as pltpu


# ----------------------------------------------------------------------------
# Pallas kernel: real block-complex contraction  out[b,p,l] = sum_q x[b,q,l]*w[q,p,l]
# (q = 2*Cin packed re/im input rows, p = 2*Cout packed re/im output rows).
# ----------------------------------------------------------------------------
def _spectral_mul_kernel(x_ref, w_ref, o_ref):
    # x_ref: (B, 2*Cin, Lp)   rows [0:Cin] = Re(x_ft), rows [Cin:2*Cin] = Im(x_ft)
    # w_ref: (2*Cin, 2*Cout, Lp)  real block-matrix [[Wr, Wi], [-Wi, Wr]]
    # o_ref: (B, 2*Cout, Lp)  rows [0:Cout] = Re(out_ft), rows [Cout:] = Im(out_ft)
    B = x_ref.shape[0]
    Q, P, L = w_ref.shape

    w = w_ref[...]                      # tiny, resident (Q*P*Lp f32 = 32 KiB here)
    # TODO(synk): at production FNO sizes (Cin/Cout >= 32, modes >= 32) do NOT load
    # the full weight into registers: add a Cout-tile grid axis (constant index over
    # batch so it is not re-fetched), read w_ref slices inside lax.fori_loop with a
    # VMEM scratch accumulator, store the weight bf16 on v6e/v7x (f32 on v5e) and
    # set vmem_limit_bytes; switch to an MXU matmul over the 2*Cin contracting dim
    # only once the LHS can supply ~128 (v5e) / ~256 (v6e/v7x) rows per tile.
    for b in range(B):                  # B = 2, static unroll
        # One hoisted broadcast per batch element; all subsequent ops are
        # full-(8,128)-tile VPU multiplies + a tree reduce over the 2*Cin axis.
        xb = jnp.broadcast_to(x_ref[b][:, None, :], (Q, P, L))
        o_ref[b, :, :] = jnp.sum(xb * w, axis=0)     # dense, lane-aligned store


def complex_channel_mix_pallas(x_packed, w_packed):
    """out[b, p, l] = sum_q x_packed[b, q, l] * w_packed[q, p, l]  (f32)."""
    B, Q, Lp = x_packed.shape
    P = w_packed.shape[1]
    return pl.pallas_call(
        _spectral_mul_kernel,
        out_shape=jax.ShapeDtypeStruct((B, P, Lp), jnp.float32),
        grid=(1,),                                   # single step: no per-step overhead
        in_specs=[
            pl.BlockSpec((B, Q, Lp), lambda i: (0, 0, 0)),
            pl.BlockSpec((Q, P, Lp), lambda i: (0, 0, 0)),
        ],
        out_specs=pl.BlockSpec((B, P, Lp), lambda i: (0, 0, 0)),
    )(x_packed, w_packed)


# ----------------------------------------------------------------------------
# Parameter construction / packing (done ONCE at init, outside the jitted forward)
# ----------------------------------------------------------------------------
def make_dense_spectral_weight(key, in_channels, out_channels, m1, m2):
    # PyTorch: core is (Cin, Cout, m1, m2, 2), xavier_uniform_, then view_as_complex.
    shape = (in_channels, out_channels, m1, m2, 2)
    receptive = m1 * m2 * 2
    fan_in = out_channels * receptive
    fan_out = in_channels * receptive
    bound = math.sqrt(6.0 / (fan_in + fan_out))
    core = jax.random.uniform(key, shape, jnp.float32, minval=-bound, maxval=bound)
    return (core[..., 0] + 1j * core[..., 1]).astype(jnp.complex64)


def pack_spectral_weights(w1, w2):
    """Pack the two complex corner weights into one real block-matrix.

    w1, w2: complex64 (Cin, Cout, m1, m2).
    Returns f32 (2*Cin, 2*Cout, Lp), Lp = round_up(2*m1*m2, 128):
        rows [0:Cin]     = [ Wr | Wi ]   (multiply Re(x))
        rows [Cin:2*Cin] = [-Wi | Wr ]   (multiply Im(x))
    so a plain real contraction over the row axis yields [Re(out) | Im(out)].
    """
    Cin, Cout, m1, m2 = w1.shape
    L = 2 * m1 * m2
    w_c = jnp.stack([w1, w2], axis=2).reshape(Cin, Cout, L)   # fuse corners on freq axis
    wr = jnp.real(w_c).astype(jnp.float32)
    wi = jnp.imag(w_c).astype(jnp.float32)
    top = jnp.concatenate([wr, wi], axis=1)                   # (Cin, 2*Cout, L)
    bot = jnp.concatenate([-wi, wr], axis=1)
    w_packed = jnp.concatenate([top, bot], axis=0)            # (2*Cin, 2*Cout, L)
    Lp = ((L + 127) // 128) * 128                             # lane-dense padding
    if Lp != L:
        w_packed = jnp.pad(w_packed, ((0, 0), (0, 0), (0, Lp - L)))
    return w_packed


# ----------------------------------------------------------------------------
# SpectralConv2d forward (dense / reconstructed / non-separable / dilate=1)
# ----------------------------------------------------------------------------
@partial(jax.jit, static_argnums=(3, 4))
def spectral_conv2d_forward(x, w_packed, bias, modes1, modes2):
    # x is NCHW (B, Cin, H, W), same convention as the PyTorch module.
    B, Cin, H, W = x.shape
    Wf = W // 2 + 1
    # Note: even modes assumed (matches the PyTorch slices1/slices2 convention;
    # odd modes make the module's negative slice retain one extra row).
    assert modes1 % 2 == 0 and modes2 % 2 == 0
    m1 = modes1 // 2
    m2 = modes2 // 2
    assert 2 * m1 <= H and m2 <= Wf, "retained Fourier modes exceed the FFT grid"
    Cout = w_packed.shape[1] // 2
    L = 2 * m1 * m2
    Lp = w_packed.shape[2]

    x_ft = jnp.fft.rfft2(x.astype(jnp.float32), axes=(-2, -1))   # (B, Cin, H, Wf)

    # Retained corner blocks, fused along one flattened frequency axis L = 2*m1*m2,
    # re/im packed on the sublane (channel) axis.
    x1 = x_ft[:, :, :m1, :m2]                    # slices1
    x2 = x_ft[:, :, H - m1:, :m2]                # slices2
    x_c = jnp.stack([x1, x2], axis=2).reshape(B, Cin, L)
    x_packed = jnp.concatenate(
        [jnp.real(x_c), jnp.imag(x_c)], axis=1).astype(jnp.float32)  # (B, 2*Cin, L)
    if Lp != L:
        x_packed = jnp.pad(x_packed, ((0, 0), (0, 0), (0, Lp - L)))

    y_packed = complex_channel_mix_pallas(x_packed, w_packed)        # (B, 2*Cout, Lp)
    y_packed = y_packed[:, :, :L]
    y_c = (y_packed[:, :Cout] + 1j * y_packed[:, Cout:]).astype(jnp.complex64)
    y_c = y_c.reshape(B, Cout, 2, m1, m2)
    y1, y2 = y_c[:, :, 0], y_c[:, :, 1]

    # Assemble out_ft without a full-size zero buffer + double scatter:
    # rows [0:m1] = y1, rows [H-m1:H] = y2, rest zero; then zero-pad the columns.
    mid = jnp.zeros((B, Cout, H - 2 * m1, m2), jnp.complex64)
    left = jnp.concatenate([y1, mid, y2], axis=2)                    # (B, Cout, H, m2)
    out_ft = jnp.pad(left, ((0, 0), (0, 0), (0, 0), (0, Wf - m2)))

    y = jnp.fft.irfft2(out_ft, s=(H, W), axes=(-2, -1))
    if bias is not None:
        y = y + bias
    return y


if __name__ == "__main__":
    # Small, module-consistent shapes.
    B, Cin, Cout = 2, 4, 4
    H = W = 16
    modes1 = modes2 = 16          # -> m1 = m2 = 8, weight (4, 4, 8, 8) complex per corner

    key = jax.random.PRNGKey(0)
    k_x, k_w1, k_w2, k_b = jax.random.split(key, 4)

    x = jax.random.normal(k_x, (B, Cin, H, W), jnp.float32)
    w1 = make_dense_spectral_weight(k_w1, Cin, Cout, modes1 // 2, modes2 // 2)
    w2 = make_dense_spectral_weight(k_w2, Cin, Cout, modes1 // 2, modes2 // 2)
    bias = jax.random.normal(k_b, (1, Cout, 1, 1), jnp.float32)

    # Pack the complex weights once at init time (kept packed across calls).
    w_packed = jax.block_until_ready(pack_spectral_weights(w1, w2))

    y = spectral_conv2d_forward(x, w_packed, bias, modes1, modes2)
    y = jax.block_until_ready(y)

    # Pure-JAX reference of the same forward pass (einsum instead of the kernel).
    m1, m2 = modes1 // 2, modes2 // 2
    x_ft = jnp.fft.rfft2(x, axes=(-2, -1))
    out_ft = jnp.zeros((B, Cout, H, W // 2 + 1), jnp.complex64)
    out_ft = out_ft.at[:, :, :m1, :m2].set(
        jnp.einsum("bixy,ioxy->boxy", x_ft[:, :, :m1, :m2], w1))
    out_ft = out_ft.at[:, :, H - m1:, :m2].set(
        jnp.einsum("bixy,ioxy->boxy", x_ft[:, :, H - m1:, :m2], w2))
    y_ref = jnp.fft.irfft2(out_ft, s=(H, W), axes=(-2, -1)) + bias

    assert y.shape == (B, Cout, H, W)
    assert jnp.allclose(y, y_ref, atol=1e-4, rtol=1e-4), "mismatch vs reference"
    print("KERNEL_OK")
</pallas_src>

<mosaic_0001>
module attributes {stable_mosaic.version = 11 : i64} {
  func.func @_spectral_mul_kernel(%arg0: i32, %arg1: memref<2x8x128xf32, #tpu.memory_space<vmem>>, %arg2: memref<8x8x128xf32, #tpu.memory_space<vmem>>, %arg3: memref<2x8x128xf32, #tpu.memory_space<vmem>>) attributes {dimension_semantics = [#tpu.dimension_semantics<arbitrary>], iteration_bounds = array<i64: 1>, scalar_prefetch = 0 : i64, scratch_operands = 0 : i64, tpu.core_type = #tpu.core_type<tc>, window_params = [{pipeline_mode = #tpu.pipeline_mode<synchronous>, transform_indices = @transform_0, window_bounds = array<i64: 2, 8, 128>}, {pipeline_mode = #tpu.pipeline_mode<synchronous>, transform_indices = @transform_1, window_bounds = array<i64: 8, 8, 128>}, {pipeline_mode = #tpu.pipeline_mode<synchronous>, transform_indices = @transform_2, window_bounds = array<i64: 2, 8, 128>}]} {
    %c0 = arith.constant 0 : index
    %c0_0 = arith.constant 0 : index
    %c0_1 = arith.constant 0 : index
    %0 = vector.load %arg2[%c0, %c0_0, %c0_1] : memref<8x8x128xf32, #tpu.memory_space<vmem>>, vector<8x8x128xf32>
    %c0_2 = arith.constant 0 : index
    %c0_3 = arith.constant 0 : index
    %c0_4 = arith.constant 0 : index
    %1 = vector.load %arg1[%c0_2, %c0_3, %c0_4] : memref<2x8x128xf32, #tpu.memory_space<vmem>>, vector<1x8x128xf32>
    %2 = vector.shape_cast %1 : vector<1x8x128xf32> to vector<8x128xf32>
    %3 = vector.shape_cast %2 : vector<8x128xf32> to vector<8x1x128xf32>
    %4 = vector.shape_cast %3 : vector<8x1x128xf32> to vector<8x1x128xf32>
    %5 = vector.broadcast %4 : vector<8x1x128xf32> to vector<8x8x128xf32>
    %6 = arith.mulf %5, %0 : vector<8x8x128xf32>
    %cst = arith.constant dense<0.000000e+00> : vector<8x128xf32>
    %7 = vector.multi_reduction <add>, %6, %cst [0] : vector<8x8x128xf32> to vector<8x128xf32>
    %c0_5 = arith.constant 0 : index
    %c0_6 = arith.constant 0 : index
    %c0_7 = arith.constant 0 : index
    %8 = vector.load %arg3[%c0_5, %c0_6, %c0_7] : memref<2x8x128xf32, #tpu.memory_space<vmem>>, vector<1x8x128xf32>
    %9 = vector.shape_cast %8 : vector<1x8x128xf32> to vector<8x128xf32>
    %10 = vector.shape_cast %7 : vector<8x128xf32> to vector<1x8x128xf32>
    tpu.vector_store %arg3[%c0_5, %c0_6, %c0_7], %10 {strides = array<i32>} : memref<2x8x128xf32, #tpu.memory_space<vmem>>, vector<1x8x128xf32>,
    %c1 = arith.constant 1 : index
    %c0_8 = arith.constant 0 : index
    %c0_9 = arith.constant 0 : index
    %11 = vector.load %arg1[%c1, %c0_8, %c0_9] : memref<2x8x128xf32, #tpu.memory_space<vmem>>, vector<1x8x128xf32>
    %12 = vector.shape_cast %11 : vector<1x8x128xf32> to vector<8x128xf32>
    %13 = vector.shape_cast %12 : vector<8x128xf32> to vector<8x1x128xf32>
    %14 = vector.shape_cast %13 : vector<8x1x128xf32> to vector<8x1x128xf32>
    %15 = vector.broadcast %14 : vector<8x1x128xf32> to vector<8x8x128xf32>
    %16 = arith.mulf %15, %0 : vector<8x8x128xf32>
    %cst_10 = arith.constant dense<0.000000e+00> : vector<8x128xf32>
    %17 = vector.multi_reduction <add>, %16, %cst_10 [0] : vector<8x8x128xf32> to vector<8x128xf32>
    %c1_11 = arith.constant 1 : index
    %c0_12 = arith.constant 0 : index
    %c0_13 = arith.constant 0 : index
    %18 = vector.load %arg3[%c1_11, %c0_12, %c0_13] : memref<2x8x128xf32, #tpu.memory_space<vmem>>, vector<1x8x128xf32>
    %19 = vector.shape_cast %18 : vector<1x8x128xf32> to vector<8x128xf32>
    %20 = vector.shape_cast %17 : vector<8x128xf32> to vector<1x8x128xf32>
    tpu.vector_store %arg3[%c1_11, %c0_12, %c0_13], %20 {strides = array<i32>} : memref<2x8x128xf32, #tpu.memory_space<vmem>>, vector<1x8x128xf32>,
    return
  }
  func.func @transform_0(%arg0: i32) -> (i32, i32, i32) {
    %c0_i32 = arith.constant 0 : i32
    %c0_i32_0 = arith.constant 0 : i32
    %c0_i32_1 = arith.constant 0 : i32
    %c0_i32_2 = arith.constant 0 : i32
    return %c0_i32, %c0_i32_0, %c0_i32_1 : i32, i32, i32
  }
  func.func @transform_1(%arg0: i32) -> (i32, i32, i32) {
    %c0_i32 = arith.constant 0 : i32
    %c0_i32_0 = arith.constant 0 : i32
    %c0_i32_1 = arith.constant 0 : i32
    %c0_i32_2 = arith.constant 0 : i32
    return %c0_i32, %c0_i32_0, %c0_i32_1 : i32, i32, i32
  }
  func.func @transform_2(%arg0: i32) -> (i32, i32, i32) {
    %c0_i32 = arith.constant 0 : i32
    %c0_i32_0 = arith.constant 0 : i32
    %c0_i32_1 = arith.constant 0 : i32
    %c0_i32_2 = arith.constant 0 : i32
    return %c0_i32, %c0_i32_0, %c0_i32_1 : i32, i32, i32
  }
}

</mosaic_0001>

<bundles_post_ra>
// kernel: reverse.1
= control target key start
LH: loop header
LB: loop body
LE: loop exit
PB: predicated region body
PF: predicated region fallthrough
CT: control target
= control target key end

     0   :  { %v72_v3 = vlaneseq  ;;  %v65_v9 = vld [vmem:[#allocation0 + $0x7] ss:$-1 sm:$0xff]  ;;  %v79_v12 = vld [vmem:[#allocation0 + $0x17] ss:$-1 sm:$0xff]  ;;  %s331_s0 = inlined_call_operand.vmem [shape: f32[2,4,16,7], index: 0, kind: input, shape index: {}]   ;;  %s332_s1 = inlined_call_operand.vmem [shape: f32[2,4,16,7], index: 1, kind: output, shape index: {}]  }
   0x1   :  { %v45_v0 = vld [vmem:[%s331_s0] sm:$0xff]  ;;  %v47_v1 = vld [vmem:[%s331_s0 + $0x8] sm:$0xff]  ;;  %v49_v2 = vld [vmem:[%s331_s0 + $0x10] sm:$0xff]  ;;  %v66_v10 = vrot.slane %v65_v9, 1  ;;  %v80_v14 = vrot.slane %v79_v12, 1 }
   0x2   :  { %46 = vst [vmem:[#allocation0 + $0x8] sm:$0xff] %v45_v0  ;;  %48 = vst [vmem:[#allocation0 + $0x18] sm:$0xff] %v47_v1  ;;  %v51_v4 = vld [vmem:[%s331_s0 + $0x18] sm:$0xff]  ;;  %v53_v5 = vld [vmem:[%s331_s0 + $0x20] sm:$0xff]  ;;  %v73_v11 = vshrl.u32 %v72_v3, 7 }
   0x3   :  { %50 = vst [vmem:[#allocation0 + $0x28] sm:$0xff] %v49_v2  ;;  %v55_v6 = vld [vmem:[%s331_s0 + $0x28] sm:$0xff]  ;;  %52 = vst [vmem:[#allocation0 + $0x38] sm:$0xff] %v51_v4  ;;  %v57_v7 = vld [vmem:[%s331_s0 + $0x30] sm:$0xff] }
   0x4   :  { %54 = vst [vmem:[#allocation0 + $0x48] sm:$0xff] %v53_v5  ;;  %56 = vst [vmem:[#allocation0 + $0x58] sm:$0xff] %v55_v6  ;;  %v59_v8 = vld [vmem:[%s331_s0 + $0x38] sm:$0xff]  ;;  %v93_v13 = vld [vmem:[#allocation0 + $0x27] ss:$-1 sm:$0xff]  ;;  %vm74_vm0 = vcmp.lt.s32.totalorder %v73_v11, 7 }
   0x5   :  { %58 = vst [vmem:[#allocation0 + $0x68] sm:$0xff] %v57_v7  ;;  %60 = vst [vmem:[#allocation0 + $0x78] sm:$0xff] %v59_v8  ;;  %v94_v15 = vrot.slane %v93_v13, 1  ;;  %v107_v16 = vld [vmem:[#allocation0 + $0x37] ss:$-1 sm:$0xff] }
   0x6   :  { %67 = vst [vmem:[#allocation1] sm:$0xff] %v66_v10  ;;  %v108_v17 = vrot.slane %v107_v16, 1  ;;  %v121_v18 = vld [vmem:[#allocation0 + $0x47] ss:$-1 sm:$0xff]  ;;  %v135_v19 = vld [vmem:[#allocation0 + $0x57] ss:$-1 sm:$0xff] }
   0x7   :  { %81 = vst [vmem:[#allocation1 + $0x8] sm:$0xff] %v80_v14  ;;  %95 = vst [vmem:[#allocation1 + $0x10] sm:$0xff] %v94_v15  ;;  %v122_v20 = vrot.slane %v121_v18, 1  ;;  %v136_v21 = vrot.slane %v135_v19, 1  ;;  %v149_v22 = vld [vmem:[#allocation0 + $0x67] ss:$-1 sm:$0xff] }
   0x8   :  { %v163_v23 = vld [vmem:[#allocation0 + $0x77] ss:$-1 sm:$0xff]  ;;  %109 = vst [vmem:[#allocation1 + $0x18] sm:$0xff] %v108_v17  ;;  %v150_v24 = vrot.slane %v149_v22, 1 }
   0x9   :  { %v164_v25 = vrot.slane %v163_v23, 1  ;;  %v70_v26 = vld [vmem:[#allocation0 + $0xf] ss:$-1 sm:$0xff]  ;;  %v84_v27 = vld [vmem:[#allocation0 + $0x1f] ss:$-1 sm:$0xff]  ;;  %123 = vst [vmem:[#allocation1 + $0x20] sm:$0xff] %v122_v20 }
   0xa   :  { %v98_v28 = vld [vmem:[#allocation0 + $0x2f] ss:$-1 sm:$0xff]  ;;  %137 = vst [vmem:[#allocation1 + $0x28] sm:$0xff] %v136_v21  ;;  %v71_v29 = vrot.slane %v70_v26, 1  ;;  %v85_v30 = vrot.slane %v84_v27, 1  ;;  %151 = vst [vmem:[#allocation1 + $0x30] sm:$0xff] %v150_v24 }
   0xb   :  { %v99_v31 = vrot.slane %v98_v28, 1  ;;  %v112_v32 = vld [vmem:[#allocation0 + $0x3f] ss:$-1 sm:$0xff]  ;;  %165 = vst [vmem:[#allocation1 + $0x38] sm:$0xff] %v164_v25  ;;  %v126_v34 = vld [vmem:[#allocation0 + $0x4f] ss:$-1 sm:$0xff] }
   0xc   :  { %v113_v33 = vrot.slane %v112_v32, 1  ;;  %v140_v35 = vld [vmem:[#allocation0 + $0x5f] ss:$-1 sm:$0xff]  ;;  %75 = vst.msk [vmem:[#allocation1] sm:$0xff] %vm74_vm0, %v71_v29  ;;  %89 = vst.msk [vmem:[#allocation1 + $0x8] sm:$0xff] %vm74_vm0, %v85_v30  ;;  %v127_v36 = vrot.slane %v126_v34, 1 }
   0xd   :  { %103 = vst.msk [vmem:[#allocation1 + $0x10] sm:$0xff] %vm74_vm0, %v99_v31  ;;  %v141_v37 = vrot.slane %v140_v35, 1  ;;  %v154_v38 = vld [vmem:[#allocation0 + $0x6f] ss:$-1 sm:$0xff]  ;;  %v168_v39 = vld [vmem:[#allocation0 + $0x7f] ss:$-1 sm:$0xff] }
   0xe   :  { %117 = vst.msk [vmem:[#allocation1 + $0x18] sm:$0xff] %vm74_vm0, %v113_v33  ;;  %v155_v40 = vrot.slane %v154_v38, 1  ;;  %v169_v41 = vrot.slane %v168_v39, 1  ;;  %131 = vst.msk [vmem:[#allocation1 + $0x20] sm:$0xff] %vm74_vm0, %v127_v36 }
   0xf   :  { %145 = vst.msk [vmem:[#allocation1 + $0x28] sm:$0xff] %vm74_vm0, %v141_v37 }
  0x10   :  { %159 = vst.msk [vmem:[#allocation1 + $0x30] sm:$0xff] %vm74_vm0, %v155_v40  ;;  %173 = vst.msk [vmem:[#allocation1 + $0x38] sm:$0xff] %vm74_vm0, %v169_v41 }
  0x13   :  { %v216_v42 = vld [vmem:[#allocation1] sm:$0xff]  ;;  %v218_v43 = vld [vmem:[#allocation1 + $0x8] sm:$0xff] }
  0x14   :  { %v220_v44 = vld [vmem:[#allocation1 + $0x10] sm:$0xff]  ;;  %217 = vst [vmem:[%s332_s1] sm:$0xff] %v216_v42  ;;  %219 = vst [vmem:[%s332_s1 + $0x8] sm:$0xff] %v218_v43 }
  0x15   :  { %221 = vst [vmem:[%s332_s1 + $0x10] sm:$0xff] %v220_v44  ;;  %v222_v45 = vld [vmem:[#allocation1 + $0x18] sm:$0xff]  ;;  %v224_v46 = vld [vmem:[#allocation1 + $0x20] sm:$0xff] }
  0x16   :  { %223 = vst [vmem:[%s332_s1 + $0x18] sm:$0xff] %v222_v45  ;;  %v226_v47 = vld [vmem:[#allocation1 + $0x28] sm:$0xff]  ;;  %225 = vst [vmem:[%s332_s1 + $0x20] sm:$0xff] %v224_v46 }
  0x17   :  { %227 = vst [vmem:[%s332_s1 + $0x28] sm:$0xff] %v226_v47  ;;  %v228_v48 = vld [vmem:[#allocation1 + $0x30] sm:$0xff]  ;;  %v230_v49 = vld [vmem:[#allocation1 + $0x38] sm:$0xff] }
  0x18   :  { %229 = vst [vmem:[%s332_s1 + $0x30] sm:$0xff] %v228_v48  ;;  %231 = vst [vmem:[%s332_s1 + $0x38] sm:$0xff] %v230_v49 }

// kernel: spectral_conv2d_forward.1
= control target key start
LH: loop header
LB: loop body
LE: loop exit
PB: predicated region body
PF: predicated region fallthrough
CT: control target
= control target key end

     0   :  { %v25_v0 = vlaneseq  ;;  %v244_v1 = vmov 1966171168   ;;  %s314_s0 = inlined_call_operand.vmem [shape: f32[2,8,128], index: 0, kind: input, shape index: {}]   ;;  %s315_s1 = inlined_call_operand.vmem [shape: f32[8,8,128], index: 1, kind: input, shape index: {}]   ;;  %s316_s2 = inlined_call_operand.vmem [shape: f32[2,8,128], index: 2, kind: output, shape index: {}]  }
   0x1   :  { %v23_v2 = vunpack.c.l.s4 %v244_v1  ;;  %v19_v4 = vld [vmem:[%s314_s0] sm:$0xff]  ;;  %v239_v7 = vld [vmem:[%s314_s0 + $0x8] sm:$0xff]  ;;  %v13_v24 = vld [vmem:[%s315_s1 + $0x10] sm:$0xff] }
   0x2   :  { %v26_v3 = vshrl.u32 %v25_v0, 7  ;;  %v21_v6 = vcombine.high %v19_v4, %v19_v4  ;;  %v129_v9 = vcombine.high %v239_v7, %v239_v7  ;;  %v11_v19 = vld [vmem:[%s315_s1] sm:$0xff]  ;;  %v12_v23 = vld [vmem:[%s315_s1 + $0x8] sm:$0xff]  ;;  %v14_v31 = vld [vmem:[%s315_s1 + $0x18] sm:$0xff] }
   0x3   :  { %v24_v5 = vunpack.c.0.s8 %v23_v2  ;;  %v15_v40 = vld [vmem:[%s315_s1 + $0x20] sm:$0xff]  ;;  %v16_v48 = vld [vmem:[%s315_s1 + $0x28] sm:$0xff]  ;;  %v17_v57 = vld [vmem:[%s315_s1 + $0x30] sm:$0xff] }
   0x4   :  { %v266_v13 = vsub.s32 0, %v26_v3  ;;  %v18_v2 = vld [vmem:[%s315_s1 + $0x38] sm:$0xff] }
   0x5   :  { %v27_v8 = vsub.s32 %v24_v5, %v26_v3 }
   0x7   :  { %v28_v10 = vrot.slane %v19_v4, %v27_v8  ;;  %v35_v11 = vrot.slane %v21_v6, %v27_v8  ;;  %v136_v12 = vrot.slane %v239_v7, %v27_v8  ;;  %v143_v17 = vrot.slane %v129_v9, %v27_v8 }
   0x9   :  { %v36_v14 = vcombine.high %v28_v10, %v28_v10  ;;  %v37_v15 = vcombine.high %v35_v11, %v35_v11  ;;  %v44_v16 = vrot.slane %v28_v10, %v27_v8  ;;  %v144_v18 = vcombine.high %v136_v12, %v136_v12 }
   0xa   :  { %v51_v20 = vrot.slane %v35_v11, %v27_v8  ;;  %v152_v26 = vrot.slane %v136_v12, %v27_v8  ;;  %v145_v34 = vcombine.high %v143_v17, %v143_v17  ;;  %v159_v42 = vrot.slane %v143_v17, %v27_v8 }
   0xb   :  { %v58_v21 = vrot.slane %v36_v14, %v27_v8  ;;  %v66_v22 = vcombine.high %v44_v16, %v44_v16  ;;  %v73_v25 = vrot.slane %v44_v16, %v266_v13  ;;  %v65_v27 = vrot.slane %v37_v15, %v27_v8 }
   0xc   :  { %v67_v32 = vcombine.high %v51_v20, %v51_v20  ;;  %v166_v35 = vrot.slane %v144_v18, %v27_v8  ;;  %v89_v37 = vrot.slane %v51_v20, %v266_v13  ;;  %v174_v43 = vcombine.high %v152_v26, %v152_v26 }
   0xd   :  { %v68_v28 = vcombine.high %v58_v21, %v58_v21  ;;  %v77_v29 = vrot.slane %v58_v21, %v266_v13  ;;  %v81_v30 = vrot.slane %v66_v22, %v266_v13  ;;  %v110_v33 = vmul.f32 %v73_v25, %v11_v19 }
   0xe   :  { %v69_v41 = vcombine.high %v65_v27, %v65_v27  ;;  %v93_v44 = vrot.slane %v65_v27, %v266_v13  ;;  %v176_v47 = vcombine.high %v166_v35, %v166_v35  ;;  %v173_v49 = vrot.slane %v145_v34, %v27_v8 }
   0xf   :  { %v85_v36 = vrot.slane %v68_v28, %v266_v13  ;;  %v111_v38 = vmul.f32 %v77_v29, %v12_v23  ;;  %v112_v39 = vmul.f32 %v81_v30, %v13_v24  ;;  %v181_v50 = vrot.slane %v152_v26, %v266_v13 }
  0x10   :  { %v185_v51 = vrot.slane %v166_v35, %v266_v13  ;;  %v189_v52 = vrot.slane %v174_v43, %v266_v13  ;;  %v97_v53 = vrot.slane %v67_v32, %v266_v13  ;;  %v114_v54 = vmul.f32 %v89_v37, %v15_v40 }
  0x11   :  { %v113_v45 = vmul.f32 %v85_v36, %v14_v31  ;;  %v118_v46 = vadd.f32 %v111_v38, %v110_v33  ;;  %v193_v56 = vrot.slane %v176_v47, %v266_v13  ;;  %v175_v58 = vcombine.high %v159_v42, %v159_v42 }
  0x12   :  { %v197_v59 = vrot.slane %v159_v42, %v266_v13  ;;  %v218_v60 = vmul.f32 %v181_v50, %v11_v19  ;;  %v219_v61 = vmul.f32 %v185_v51, %v12_v23  ;;  %v101_v62 = vrot.slane %v69_v41, %v266_v13 }
  0x13   :  { %v119_v55 = vadd.f32 %v118_v46, %v112_v39  ;;  %v115_v63 = vmul.f32 %v93_v44, %v16_v48  ;;  %v220_v1 = vmul.f32 %v189_v52, %v13_v24  ;;  %v177_v3 = vcombine.high %v173_v49, %v173_v49 }
  0x14   :  { %v201_v4 = vrot.slane %v173_v49, %v266_v13  ;;  %v221_v5 = vmul.f32 %v193_v56, %v14_v31  ;;  %v226_v6 = vadd.f32 %v219_v61, %v218_v60  ;;  %v116_v7 = vmul.f32 %v97_v53, %v17_v57 }
  0x15   :  { %v120_v0 = vadd.f32 %v119_v55, %v113_v45  ;;  %v205_v9 = vrot.slane %v175_v58, %v266_v13  ;;  %v222_v10 = vmul.f32 %v197_v59, %v15_v40  ;;  %v117_v12 = vmul.f32 %v101_v62, %v18_v2 }
  0x16   :  { %v227_v11 = vadd.f32 %v226_v6, %v220_v1  ;;  %v209_v15 = vrot.slane %v177_v3, %v266_v13  ;;  %v223_v16 = vmul.f32 %v201_v4, %v16_v48 }
  0x17   :  { %v121_v8 = vadd.f32 %v120_v0, %v114_v54  ;;  %v224_v19 = vmul.f32 %v205_v9, %v17_v57 }
  0x18   :  { %v228_v17 = vadd.f32 %v227_v11, %v221_v5  ;;  %v225_v22 = vmul.f32 %v209_v15, %v18_v2 }
  0x19   :  { %v122_v14 = vadd.f32 %v121_v8, %v115_v63 }
  0x1a   :  { %v229_v20 = vadd.f32 %v228_v17, %v222_v10 }
  0x1b   :  { %v123_v18 = vadd.f32 %v122_v14, %v116_v7 }
  0x1c   :  { %v230_v23 = vadd.f32 %v229_v20, %v223_v16 }
  0x1d   :  { %v124_v21 = vadd.f32 %v123_v18, %v117_v12 }
  0x1e   :  { %v231_v24 = vadd.f32 %v230_v23, %v224_v19 }
  0x1f   :  { %125 = vst [vmem:[%s316_s2] sm:$0xff] %v124_v21 }
  0x20   :  { %v232_v25 = vadd.f32 %v231_v24, %v225_v22 }
  0x22   :  { %240 = vst [vmem:[%s316_s2 + $0x8] sm:$0xff] %v232_v25 }

</bundles_post_ra>
